<compile_context>
chip_gen: v7x
topology: tpu7x:2x2x1
jax: 0.10.0
libtpu: 0.0.40
codegen_flags: <defaults>
</compile_context>

<pallas_src>
import jax
import jax.numpy as jnp
from jax import lax
from jax.experimental import pallas as pl
from jax.experimental.pallas import tpu as pltpu


def _make_intermodule_kernel(C, mxu_dtype, approx_recip):
    """Kernel operating on one batch element in channels-first (C, N) layout."""

    def kernel(x_ref, w_ref, b_ref, o_ref):
        # x_ref:  (1, C, N)  f32 tile for one batch element
        # w_ref:  (3C, C)    fused [Wq; Wk; Wv], already in mxu_dtype
        # b_ref:  (3C, 1)    fused [bq; bk; bv], f32
        x = x_ref[0]                                    # (C, N) f32
        xm = x.astype(mxu_dtype)

        # Fused projection: (3C, C) @ (C, N) -> (3C, N), f32 accumulate + bias.
        qkv = jnp.dot(w_ref[...], xm,
                      preferred_element_type=jnp.float32) + b_ref[...]

        q = qkv[0:C]                                    # (C, N)
        k = qkv[C:2 * C]                                # (C, N)
        v = qkv[2 * C:3 * C]                            # (C, N)

        # energy[n, m] = sum_c q[c, n] * k[c, m]  -> (N, N); contracting dim 0
        # of both operands folds the "transpose" into the MXU feed.
        energy = lax.dot_general(
            q.astype(mxu_dtype), k.astype(mxu_dtype),
            dimension_numbers=(((0,), (0,)), ((), ())),
            preferred_element_type=jnp.float32)

        # Numerically-stable softmax over the last axis, all f32 (v5e has no
        # bf16 VPU/EUP; f32 exp stays correct everywhere).
        m_max = jnp.max(energy, axis=-1, keepdims=True)
        p = jnp.exp(energy - m_max)
        denom = jnp.sum(p, axis=-1, keepdims=True)
        att = p * pl.reciprocal(denom, approx=approx_recip)

        # out[c, n] = sum_m v[c, m] * att[n, m]  -> (C, N); contract lane dims.
        out = lax.dot_general(
            v.astype(mxu_dtype), att.astype(mxu_dtype),
            dimension_numbers=(((1,), (1,)), ((), ())),
            preferred_element_type=jnp.float32)

        # Residual add in f32; lane-dense (C, N) store.
        o_ref[0] = (x + out).astype(o_ref.dtype)

    return kernel


def intermodule_forward(x_nchw, wq, bq, wk, bk, wv, bv, *, mxu_dtype=jnp.bfloat16):
    """x_nchw: (B, C, H, W) f32. w*: (C, C) from nn.Conv2d(C, C, 1), b*: (C,)."""
    B, C, H, W = x_nchw.shape
    N = H * W

    # Channels-first flattened layout: (B, C, N). Pure reshape, no transpose.
    x_cn = x_nchw.reshape(B, C, N)

    # Fuse the three projections into a single weight / bias; pre-cast the
    # weight to the MXU dtype (bias stays f32 for the accumulate add).
    w_qkv = jnp.concatenate([wq, wk, wv], axis=0).astype(mxu_dtype)      # (3C, C)
    b_qkv = jnp.concatenate([bq, bk, bv], axis=0).reshape(3 * C, 1)      # (3C, 1)
    b_qkv = b_qkv.astype(jnp.float32)

    use_fast_path = (mxu_dtype != jnp.float32)
    kernel = _make_intermodule_kernel(C, mxu_dtype, approx_recip=use_fast_path)

    full2d = lambda b: (0, 0)

    out_cn = pl.pallas_call(
        kernel,
        out_shape=jax.ShapeDtypeStruct((B, C, N), x_cn.dtype),
        grid_spec=pltpu.PrefetchScalarGridSpec(
            num_scalar_prefetch=0,
            grid=(B,),
            in_specs=[
                pl.BlockSpec((1, C, N), lambda b: (b, 0, 0)),    # x (one batch)
                pl.BlockSpec((3 * C, C), full2d),                # fused W_qkv
                pl.BlockSpec((3 * C, 1), full2d),                # fused b_qkv
            ],
            out_specs=pl.BlockSpec((1, C, N), lambda b: (b, 0, 0)),
        ),
        compiler_params=pltpu.CompilerParams(
            dimension_semantics=("parallel",)),
    )(x_cn, w_qkv, b_qkv)

    # (B, C, N) -> NCHW: free reshape.
    return out_cn.reshape(B, C, H, W)


def _reference_forward(x, wq, bq, wk, bk, wv, bv):
    """Pure-JAX reference mirroring the PyTorch forward exactly (all f32)."""
    B, C, H, W = x.shape
    N = H * W

    def conv1x1(x, w, b):  # (B,C,H,W), (Co,Ci), (Co,)
        return jnp.einsum("bihw,oi->bohw", x, w) + b[None, :, None, None]

    k_map = conv1x1(x, wk, bk).reshape(B, -1, N)                            # (B, C, N)
    q_map = jnp.transpose(conv1x1(x, wq, bq).reshape(B, -1, N), (0, 2, 1))  # (B, N, C)
    energy = jnp.einsum("bnc,bcm->bnm", q_map, k_map)                       # (B, N, N)
    att = jax.nn.softmax(energy, axis=-1)
    v_map = conv1x1(x, wv, bv).reshape(B, -1, N)                            # (B, C, N)
    out = jnp.einsum("bcm,bnm->bcn", v_map, att).reshape(B, C, H, W)
    return x + out


if __name__ == "__main__":
    B, C, H, W = 2, 4, 16, 16  # In_channels == Out_channels == 4

    key = jax.random.PRNGKey(0)
    kx, kwq, kbq, kwk, kbk, kwv, kbv = jax.random.split(key, 7)

    x = jax.random.normal(kx, (B, C, H, W), dtype=jnp.float32)
    # Deterministic synthetic conv1x1 parameters (shapes from nn.Conv2d(C, C, 1)).
    wq = jax.random.normal(kwq, (C, C), dtype=jnp.float32) * 0.1
    bq = jax.random.normal(kbq, (C,), dtype=jnp.float32) * 0.1
    wk = jax.random.normal(kwk, (C, C), dtype=jnp.float32) * 0.1
    bk = jax.random.normal(kbk, (C,), dtype=jnp.float32) * 0.1
    wv = jax.random.normal(kwv, (C, C), dtype=jnp.float32) * 0.1
    bv = jax.random.normal(kbv, (C,), dtype=jnp.float32) * 0.1

    y_ref = jax.block_until_ready(_reference_forward(x, wq, bq, wk, bk, wv, bv))

    # Exact path (f32 MXU operands, exact reciprocal): tight tolerance.
    y_f32 = jax.block_until_ready(
        intermodule_forward(x, wq, bq, wk, bk, wv, bv, mxu_dtype=jnp.float32))
    assert y_f32.shape == (B, C, H, W)
    assert jnp.allclose(y_f32, y_ref, atol=1e-4, rtol=1e-4), "f32 path mismatch vs reference"

    # Fast path (bf16 MXU operands, f32 accumulation + f32 softmax, approx
    # reciprocal): same semantics, bf16-rounding-level tolerance.
    y_bf16 = jax.block_until_ready(
        intermodule_forward(x, wq, bq, wk, bk, wv, bv, mxu_dtype=jnp.bfloat16))
    assert y_bf16.shape == (B, C, H, W)
    assert jnp.allclose(y_bf16, y_ref, atol=2e-2, rtol=2e-2), "bf16 path mismatch vs reference"

    print("KERNEL_OK")
</pallas_src>

<mosaic_0001>
module attributes {stable_mosaic.version = 11 : i64} {
  func.func @kernel(%arg0: i32, %arg1: memref<1x4x256xf32, #tpu.memory_space<vmem>>, %arg2: memref<12x4xf32, #tpu.memory_space<vmem>>, %arg3: memref<12x1xf32, #tpu.memory_space<vmem>>, %arg4: memref<1x4x256xf32, #tpu.memory_space<vmem>>) attributes {dimension_semantics = [#tpu.dimension_semantics<parallel>], iteration_bounds = array<i64: 2>, scalar_prefetch = 0 : i64, scratch_operands = 0 : i64, tpu.core_type = #tpu.core_type<tc>, window_params = [{transform_indices = @transform_0, window_bounds = array<i64: 1, 4, 256>}, {pipeline_mode = #tpu.pipeline_mode<synchronous>, transform_indices = @transform_1, window_bounds = array<i64: 12, 4>}, {pipeline_mode = #tpu.pipeline_mode<synchronous>, transform_indices = @transform_2, window_bounds = array<i64: 12, 1>}, {transform_indices = @transform_3, window_bounds = array<i64: 1, 4, 256>}]} {
    %c0 = arith.constant 0 : index
    %c0_0 = arith.constant 0 : index
    %c0_1 = arith.constant 0 : index
    %0 = vector.load %arg1[%c0, %c0_0, %c0_1] : memref<1x4x256xf32, #tpu.memory_space<vmem>>, vector<1x4x256xf32>
    %1 = vector.shape_cast %0 : vector<1x4x256xf32> to vector<4x256xf32>
    %c0_2 = arith.constant 0 : index
    %c0_3 = arith.constant 0 : index
    %2 = vector.load %arg2[%c0_2, %c0_3] : memref<12x4xf32, #tpu.memory_space<vmem>>, vector<12x4xf32>
    %cst = arith.constant dense<0.000000e+00> : vector<12x256xf32>
    %3 = tpu.matmul %2, %1, %cst {dimension_numbers = #tpu.dot_dimension_numbers<[1], [0], [0], [1], [0, 0, 1, 1], [], []>} : vector<12x4xf32>, vector<4x256xf32>, vector<12x256xf32> -> vector<12x256xf32>
    %c0_4 = arith.constant 0 : index
    %c0_5 = arith.constant 0 : index
    %4 = vector.load %arg3[%c0_4, %c0_5] : memref<12x1xf32, #tpu.memory_space<vmem>>, vector<12x1xf32>
    %5 = vector.broadcast %4 : vector<12x1xf32> to vector<12x256xf32>
    %6 = arith.addf %3, %5 : vector<12x256xf32>
    %7 = vector.extract_strided_slice %6 {offsets = [0, 0], sizes = [4, 256], strides = [1, 1]} : vector<12x256xf32> to vector<4x256xf32>
    %8 = vector.extract_strided_slice %6 {offsets = [4, 0], sizes = [4, 256], strides = [1, 1]} : vector<12x256xf32> to vector<4x256xf32>
    %9 = vector.extract_strided_slice %6 {offsets = [8, 0], sizes = [4, 256], strides = [1, 1]} : vector<12x256xf32> to vector<4x256xf32>
    %cst_6 = arith.constant dense<0.000000e+00> : vector<256x256xf32>
    %10 = tpu.matmul %7, %8, %cst_6 {dimension_numbers = #tpu.dot_dimension_numbers<[0], [0], [1], [1], [0, 1, 1, 1], [], []>} : vector<4x256xf32>, vector<4x256xf32>, vector<256x256xf32> -> vector<256x256xf32>
    %cst_7 = arith.constant dense<0xFF800000> : vector<256xf32>
    %11 = vector.multi_reduction <maximumf>, %10, %cst_7 [1] : vector<256x256xf32> to vector<256xf32>
    %12 = vector.shape_cast %11 : vector<256xf32> to vector<256x1xf32>
    %13 = vector.broadcast %12 : vector<256x1xf32> to vector<256x256xf32>
    %14 = arith.subf %10, %13 : vector<256x256xf32>
    %15 = math.exp %14 : vector<256x256xf32>
    %cst_8 = arith.constant dense<0.000000e+00> : vector<256xf32>
    %16 = vector.multi_reduction <add>, %15, %cst_8 [1] : vector<256x256xf32> to vector<256xf32>
    %17 = vector.shape_cast %16 : vector<256xf32> to vector<256x1xf32>
    %18 = tpu.reciprocal %17 : vector<256x1xf32> -> vector<256x1xf32>
    %19 = vector.broadcast %18 : vector<256x1xf32> to vector<256x256xf32>
    %20 = arith.mulf %15, %19 : vector<256x256xf32>
    %cst_9 = arith.constant dense<0.000000e+00> : vector<4x256xf32>
    %21 = tpu.matmul %9, %20, %cst_9 {dimension_numbers = #tpu.dot_dimension_numbers<[1], [1], [0], [0], [0, 0, 1, 0], [], []>} : vector<4x256xf32>, vector<256x256xf32>, vector<4x256xf32> -> vector<4x256xf32>
    %22 = arith.addf %1, %21 : vector<4x256xf32>
    %c0_10 = arith.constant 0 : index
    %c0_11 = arith.constant 0 : index
    %c0_12 = arith.constant 0 : index
    %23 = vector.load %arg4[%c0_10, %c0_11, %c0_12] : memref<1x4x256xf32, #tpu.memory_space<vmem>>, vector<1x4x256xf32>
    %24 = vector.shape_cast %23 : vector<1x4x256xf32> to vector<4x256xf32>
    %25 = vector.shape_cast %22 : vector<4x256xf32> to vector<1x4x256xf32>
    tpu.vector_store %arg4[%c0_10, %c0_11, %c0_12], %25 {strides = array<i32>} : memref<1x4x256xf32, #tpu.memory_space<vmem>>, vector<1x4x256xf32>,
    return
  }
  func.func @transform_0(%arg0: i32) -> (i32, i32, i32) {
    %c0_i32 = arith.constant 0 : i32
    %c0_i32_0 = arith.constant 0 : i32
    %c0_i32_1 = arith.constant 0 : i32
    return %arg0, %c0_i32, %c0_i32_0 : i32, i32, i32
  }
  func.func @transform_1(%arg0: i32) -> (i32, i32) {
    %c0_i32 = arith.constant 0 : i32
    %c0_i32_0 = arith.constant 0 : i32
    %c0_i32_1 = arith.constant 0 : i32
    return %c0_i32, %c0_i32_0 : i32, i32
  }
  func.func @transform_2(%arg0: i32) -> (i32, i32) {
    %c0_i32 = arith.constant 0 : i32
    %c0_i32_0 = arith.constant 0 : i32
    %c0_i32_1 = arith.constant 0 : i32
    return %c0_i32, %c0_i32_0 : i32, i32
  }
  func.func @transform_3(%arg0: i32) -> (i32, i32, i32) {
    %c0_i32 = arith.constant 0 : i32
    %c0_i32_0 = arith.constant 0 : i32
    %c0_i32_1 = arith.constant 0 : i32
    return %arg0, %c0_i32, %c0_i32_0 : i32, i32, i32
  }
}

</mosaic_0001>

<bundles_post_ra>
// kernel: tpu_custom_call.1
= control target key start
LH: loop header
LB: loop body
LE: loop exit
PB: predicated region body
PF: predicated region fallthrough
CT: control target
= control target key end

     0   :  { %8 = vsyncpa [#allocation3], 0  ;;  %s2501_s0 = inlined_call_operand.vmem [shape: f32[2,4,256], index: 0, kind: input, shape index: {}]   ;;  %s2502_s1 = inlined_call_operand.vmem [shape: f32[12,4], index: 1, kind: input, shape index: {}]   ;;  %s2503_s2 = inlined_call_operand.vmem [shape: f32[12,1], index: 2, kind: input, shape index: {}]   ;;  %s2504_s3 = inlined_call_operand.hbm [shape: f32[2,4,256], index: 3, kind: output, shape index: {}]  }
   0x1   :  { %10 = vsyncpa [#allocation3 + $0x1], 0  ;;  %s1771_s12 = smov 0   ;;  %s1773_s13 = smov 0  }
   0x2   :  { %s1775_s14 = smov 0   ;;  %s1777_s15 = smov 0  }
   0x3 LB: > { %s1792_s16 = sadd.s32 4294967295, %s1746_s15   ;;  %s1331_s17 = sadd.s32 4294967294, %s1746_s15   ;;  %s1746_s15 = sphi %s1777_s15, %s2599_s15   ;;  %s1742_s14 = sphi %s1775_s14, %s2598_s14   ;;  %s1738_s13 = sphi %s1773_s13, %s2597_s13   ;;  %s1734_s12 = sphi %s1771_s12, %s2596_s12  }
   0x4   : > { %s1796_s18 = sadd.s32 1, %s1746_s15   ;;  %s91_s19 = sadd.s32 1, %s1742_s14 }
   0x5   : > { %s88_s20 = ssub.s32 %s1746_s15, %s1796_s18  ;;  %p101_p0 = scmp.ne.s32.totalorder %s1742_s14, %s1738_s13 }
   0x6   : > { %p89_p1 = scmp.eq.s32.totalorder %s88_s20, 0  ;;  %p102_p2 = scmp.eq.s32.totalorder %s1792_s16, 1 }
   0x7   : > { %p107_p3 = scmp.ne.s32.totalorder %s1738_s13, %s1734_s12  ;;  %p108_p4 = scmp.eq.s32.totalorder %s1331_s17, 1 }
   0x8   : > { %s1807_s21 = scalar_select %p89_p1, %s1742_s14, %s91_s19  }
   0x9   : > { %p1809_p5 = por %p102_p2, %p101_p0  ;;  %p1813_p6 = por %p108_p4, %p107_p3 }
   0xa   : > { %p1334_p7 = scmp.ge.s32.totalorder %s1746_s15, 1  ;;  %p140_p8 = scmp.lt.s32.totalorder %s1746_s15, 3 }
   0xc   : > { %p141_p9 = pnand %p1334_p7, %p140_p8 }
   0xe   : > { %144 = sbr.rel (%p141_p9) target bundleno = 1338 (0x53a), region = 32 }
  0x15   : > { %p164_p10 = scmp.lt.s32.totalorder %s1792_s16, 1  ;;  %v1748_v0 = vmov 0.0   ;;  %v1749_v1 = vmov 0   ;;  %v172_v2 = vld [vmem:[%s2503_s2] sm:$0xff]  ;;  %vm193_vm0 = vcmask 1043456   ;;  %vm186_vm1 = vcmask 31744  }
  0x16   : > { %262 = vmatprep.mubr.f32.mxu0 %v1748_v0  ;;  %1488 = vset.pattern.permute.xlu0 %v1749_v1  ;;  %v170_v5 = vld [vmem:[%s2502_s1] sm:$0xff]  ;;  %s161_s10 = sand.u32 1, %s1738_s13   ;;  %s1382_s17 = sshll.u32 %s1792_s16, 7 }
  0x17   : > { %s165_s26 = scalar_select %p164_p10, %s1792_s16, 1  ;;  %176 = vperm.xlu0 %1488, %v172_v2   ;;  %507 = vmatprep.mubr.f32.mxu1 %v1748_v0 }
  0x18   : > { %s1335_s11 = sshll.u32 %s161_s10, 3  ;;  %s1750_s16 = smov [#allocation2]  }
  0x19   : > { %s1381_s27 = sshll.u32 %s165_s26, 3  ;;  %s163_s19 = scalar_lea.vmem [#allocation2], %s1335_s11 }
  0x1a   : > { %s1829_s30 = scalar_lea.vmem %s2501_s0, %s1381_s27  ;;  %s1272_s20 = sshll.u32 %s163_s19, 4  ;;  %s2461_s20 = int_to_ptr.vmem [resolvable:$true] %s1272_s20 }
  0x1b   : > { %v169_v3 = vld [vmem:[%s1829_s30] sm:$0xff]  ;;  %s2459_s26 = scalar_lea.hbm %s2504_s3, %s1382_s17  ;;  %s1258_s27 = scalar_lea.sflag [#allocation3], %s161_s10 }
  0x1c   : > { %v185_v4 = vcombine.high %v169_v3, %v169_v3  ;;  %s1684_s28 = scalar_lea.vmem %s2461_s20, 128  ;;  %s1688_s29 = sshll.u32 %s1750_s16, 4  ;;  %s1689_s29 = int_to_ptr.vmem [resolvable:$false] %s1688_s29 }
  0x1d   : > { %p1685_p11 = scmp.ne.s32.totalorder %s2461_s20, %s1684_s28  ;;  %p1691_p0 = scmp.lt.s32.totalorder %s2461_s20, %s1689_s29 }
  0x1e   : > { %1338 = vmatprep.subr.msk.mxu0 %vm193_vm0, %v185_v4 }
  0x1f   : > { %1339 = vmatpush1.msk.msra.mxu0 %vm193_vm0, %v169_v3  ;;  %p1686_p12 = pnand %p1685_p11, %p1809_p5 }
  0x20   : > { %1340 = vmatmul.mubr.msk.f32.vlgmr.msra.gmra.mrb[0].mxu0 %vm186_vm1, %v170_v5 }
  0x21   : > { %268 = vmatprep.mubr.f32.mxu0 %v1748_v0  ;;  %p1687_p13 = pneg %p1686_p12 }
  0x96   : > { %v177_v6 = vpop.permute.xlu0 %176 }
  0xf3   : > { %v264_v7 = vpop.f32.mrb[0].mxu0 }
  0xf4   : > { %v265_v8 = vadd.f32 %v264_v7, %v177_v6  ;;  %v266_v9 = vpop.f32.mrb[1].mxu0 }
  0xf5   : > { %v267_v10 = vadd.f32 %v266_v9, %v177_v6 }
  0xf6   : > { %275 = vxpose.xlu0.b32.start.end [1/1] (short) %v265_v8, 128  ;;  %v341_v12 = vrot.slane %v265_v8, 4 }
  0xf7   : > { %307 = vxpose.xlu1.b32.start.end [1/1] (short) %v267_v10, 128  ;;  %v342_v11 = vrot.slane %v267_v10, 4 }
  0xf9   : > { %1342 = vmatprep.subr.msk.mxu1 %vm193_vm0, %v342_v11 }
  0xfa   : > { %1343 = vmatpush1.msk.msra.mxu1 %vm193_vm0, %v341_v12 }
 0x115   : > { %1489 = vset.pattern.permute.xlu1 %v1749_v1 }
 0x176   : > { %v291_v13 = vpop.trf.xlu0 }
 0x177   : > { %1344 = vmatmul.mubr.msk.f32.vlgmr.msra.gmra.mrb[0].mxu1 %vm186_vm1, %v291_v13  ;;  %v323_v22 = vpop.trf.xlu1 }
 0x178   : > { %513 = vmatprep.mubr.f32.mxu1 %v1748_v0 }
 0x17a   : > { %v292_v14 = vpop.trf.xlu0 }
 0x17b   : > { %1345 = vmatmul.mubr.msk.f32.gmra.mrb[2].mxu1 %vm186_vm1, %v292_v14  ;;  %v324_v25 = vpop.trf.xlu1 }
 0x17c   : > { %519 = vmatprep.mubr.f32.mxu1 %v1748_v0 }
 0x17e   : > { %v293_v15 = vpop.trf.xlu0 }
 0x17f   : > { %1346 = vmatmul.mubr.msk.f32.gmra.mrb[4].mxu1 %vm186_vm1, %v293_v15  ;;  %v325_v27 = vpop.trf.xlu1 }
 0x180   : > { %525 = vmatprep.mubr.f32.mxu1 %v1748_v0 }
 0x182   : > { %v294_v16 = vpop.trf.xlu0 }
 0x183   : > { %1347 = vmatmul.mubr.msk.f32.gmra.mrb[6].mxu1 %vm186_vm1, %v294_v16  ;;  %v326_v30 = vpop.trf.xlu1 }
 0x184   : > { %531 = vmatprep.mubr.f32.mxu1 %v1748_v0 }
 0x186   : > { %v295_v17 = vpop.trf.xlu0 }
 0x187   : > { %1348 = vmatmul.mubr.msk.f32.gmra.mrb[8].mxu1 %vm186_vm1, %v295_v17  ;;  %v327_v32 = vpop.trf.xlu1 }
 0x188   : > { %537 = vmatprep.mubr.f32.mxu1 %v1748_v0 }
 0x18a   : > { %v296_v18 = vpop.trf.xlu0 }
 0x18b   : > { %1349 = vmatmul.mubr.msk.f32.gmra.mrb[10].mxu1 %vm186_vm1, %v296_v18  ;;  %v328_v34 = vpop.trf.xlu1 }
 0x18c   : > { %543 = vmatprep.mubr.f32.mxu1 %v1748_v0 }
 0x18e   : > { %v297_v19 = vpop.trf.xlu0 }
 0x18f   : > { %1350 = vmatmul.mubr.msk.f32.gmra.mrb[12].mxu1 %vm186_vm1, %v297_v19  ;;  %v329_v35 = vpop.trf.xlu1 }
 0x190   : > { %549 = vmatprep.mubr.f32.mxu1 %v1748_v0 }
 0x192   : > { %v298_v20 = vpop.trf.xlu0 }
 0x193   : > { %1351 = vmatmul.mubr.msk.f32.gmra.mrb[14].mxu1 %vm186_vm1, %v298_v20  ;;  %v330_v36 = vpop.trf.xlu1 }
 0x194   : > { %555 = vmatprep.mubr.f32.mxu1 %v1748_v0 }
 0x196   : > { %v299_v21 = vpop.trf.xlu0 }
 0x197   : > { %1352 = vmatmul.mubr.msk.f32.gmra.mrb[16].mxu1 %vm186_vm1, %v299_v21  ;;  %v331_v37 = vpop.trf.xlu1 }
 0x198   : > { %561 = vmatprep.mubr.f32.mxu1 %v1748_v0 }
 0x19a   : > { %v300_v23 = vpop.trf.xlu0 }
 0x19b   : > { %1353 = vmatmul.mubr.msk.f32.gmra.mrb[18].mxu1 %vm186_vm1, %v300_v23  ;;  %v332_v38 = vpop.trf.xlu1 }
 0x19c   : > { %567 = vmatprep.mubr.f32.mxu1 %v1748_v0 }
 0x19e   : > { %v301_v24 = vpop.trf.xlu0 }
 0x19f   : > { %1354 = vmatmul.mubr.msk.f32.gmra.mrb[20].mxu1 %vm186_vm1, %v301_v24  ;;  %v333_v39 = vpop.trf.xlu1 }
 0x1a0   : > { %573 = vmatprep.mubr.f32.mxu1 %v1748_v0 }
 0x1a2   : > { %v302_v26 = vpop.trf.xlu0 }
 0x1a3   : > { %1355 = vmatmul.mubr.msk.f32.gmra.mrb[22].mxu1 %vm186_vm1, %v302_v26  ;;  %v334_v40 = vpop.trf.xlu1 }
 0x1a4   : > { %579 = vmatprep.mubr.f32.mxu1 %v1748_v0 }
 0x1a6   : > { %v303_v28 = vpop.trf.xlu0 }
 0x1a7   : > { %1356 = vmatmul.mubr.msk.f32.gmra.mrb[24].mxu1 %vm186_vm1, %v303_v28  ;;  %v335_v41 = vpop.trf.xlu1 }
 0x1a8   : > { %585 = vmatprep.mubr.f32.mxu1 %v1748_v0 }
 0x1aa   : > { %v304_v29 = vpop.trf.xlu0 }
 0x1ab   : > { %1357 = vmatmul.mubr.msk.f32.gmra.mrb[26].mxu1 %vm186_vm1, %v304_v29  ;;  %v336_v42 = vpop.trf.xlu1 }
 0x1ac   : > { %591 = vmatprep.mubr.f32.mxu1 %v1748_v0 }
 0x1ae   : > { %v305_v31 = vpop.trf.xlu0 }
 0x1af   : > { %1358 = vmatmul.mubr.msk.f32.gmra.mrb[28].mxu1 %vm186_vm1, %v305_v31  ;;  %v337_v43 = vpop.trf.xlu1 }
 0x1b0   : > { %597 = vmatprep.mubr.f32.mxu1 %v1748_v0 }
 0x1b2   : > { %v306_v33 = vpop.trf.xlu0 }
 0x1b3   : > { %1359 = vmatmul.mubr.msk.f32.gmra.mrb[30].mxu1 %vm186_vm1, %v306_v33  ;;  %v338_v44 = vpop.trf.xlu1 }
 0x1b4   : > { %603 = vmatprep.mubr.f32.mxu1 %v1748_v0 }
 0x1b7   : > { %1360 = vmatmul.mubr.msk.f32.gmra.mrb[32].mxu1 %vm186_vm1, %v323_v22 }
 0x1b8   : > { %609 = vmatprep.mubr.f32.mxu1 %v1748_v0 }
 0x1bb   : > { %1361 = vmatmul.mubr.msk.f32.gmra.mrb[34].mxu1 %vm186_vm1, %v324_v25 }
 0x1bc   : > { %615 = vmatprep.mubr.f32.mxu1 %v1748_v0 }
 0x1bf   : > { %1362 = vmatmul.mubr.msk.f32.gmra.mrb[36].mxu1 %vm186_vm1, %v325_v27 }
 0x1c0   : > { %621 = vmatprep.mubr.f32.mxu1 %v1748_v0 }
 0x1c3   : > { %1363 = vmatmul.mubr.msk.f32.gmra.mrb[38].mxu1 %vm186_vm1, %v326_v30 }
 0x1c4   : > { %627 = vmatprep.mubr.f32.mxu1 %v1748_v0 }
 0x1c7   : > { %1364 = vmatmul.mubr.msk.f32.gmra.mrb[40].mxu1 %vm186_vm1, %v327_v32 }
 0x1c8   : > { %633 = vmatprep.mubr.f32.mxu1 %v1748_v0 }
 0x1cb   : > { %1365 = vmatmul.mubr.msk.f32.gmra.mrb[42].mxu1 %vm186_vm1, %v328_v34 }
 0x1cc   : > { %639 = vmatprep.mubr.f32.mxu1 %v1748_v0 }
 0x1cf   : > { %1366 = vmatmul.mubr.msk.f32.gmra.mrb[44].mxu1 %vm186_vm1, %v329_v35 }
 0x1d0   : > { %645 = vmatprep.mubr.f32.mxu1 %v1748_v0 }
 0x1d3   : > { %1367 = vmatmul.mubr.msk.f32.gmra.mrb[46].mxu1 %vm186_vm1, %v330_v36 }
 0x1d4   : > { %651 = vmatprep.mubr.f32.mxu1 %v1748_v0 }
 0x1d7   : > { %1368 = vmatmul.mubr.msk.f32.gmra.mrb[48].mxu1 %vm186_vm1, %v331_v37 }
 0x1d8   : > { %657 = vmatprep.mubr.f32.mxu1 %v1748_v0 }
 0x1db   : > { %1369 = vmatmul.mubr.msk.f32.gmra.mrb[50].mxu1 %vm186_vm1, %v332_v38 }
 0x1dc   : > { %663 = vmatprep.mubr.f32.mxu1 %v1748_v0 }
 0x1df   : > { %1370 = vmatmul.mubr.msk.f32.gmra.mrb[52].mxu1 %vm186_vm1, %v333_v39 }
 0x1e0   : > { %669 = vmatprep.mubr.f32.mxu1 %v1748_v0 }
 0x1e3   : > { %1371 = vmatmul.mubr.msk.f32.gmra.mrb[54].mxu1 %vm186_vm1, %v334_v40 }
 0x1e4   : > { %675 = vmatprep.mubr.f32.mxu1 %v1748_v0 }
 0x1e7   : > { %1372 = vmatmul.mubr.msk.f32.gmra.mrb[56].mxu1 %vm186_vm1, %v335_v41 }
 0x1e8   : > { %681 = vmatprep.mubr.f32.mxu1 %v1748_v0 }
 0x1eb   : > { %1373 = vmatmul.mubr.msk.f32.gmra.mrb[58].mxu1 %vm186_vm1, %v336_v42 }
 0x1ec   : > { %687 = vmatprep.mubr.f32.mxu1 %v1748_v0 }
 0x1ef   : > { %1374 = vmatmul.mubr.msk.f32.gmra.mrb[60].mxu1 %vm186_vm1, %v337_v43 }
 0x1f0   : > { %693 = vmatprep.mubr.f32.mxu1 %v1748_v0 }
 0x1f3   : > { %1375 = vmatmul.mubr.msk.f32.gmra.mrb[62].mxu1 %vm186_vm1, %v338_v44 }
 0x24a   : > { %v1904_v45 = vpop.f32.mrb[0].mxu1 }
 0x24b   : > { %v1906_v46 = vpop.f32.mrb[1].mxu1 }
 0x24c   : > { %v700_v47 = vmax.f32 %v1904_v45, %v1906_v46 }
 0x24e   : > { %701 = vmax.xlane.f32.xlu1 %v700_v47  ;;  %v1910_v48 = vpop.f32.mrb[2].mxu1 }
 0x24f   : > { %v1912_v49 = vpop.f32.mrb[3].mxu1 }
 0x250   : > { %v703_v50 = vmax.f32 %v1910_v48, %v1912_v49 }
 0x252   : > { %704 = vmax.xlane.f32.xlu0 %v703_v50  ;;  %v1916_v51 = vpop.f32.mrb[4].mxu1 }
 0x253   : > { %v1918_v52 = vpop.f32.mrb[5].mxu1 }
 0x254   : > { %v706_v53 = vmax.f32 %v1916_v51, %v1918_v52 }
 0x256   : > { %707 = vmax.xlane.f32.xlu1 %v706_v53  ;;  %v1922_v54 = vpop.f32.mrb[6].mxu1 }
 0x257   : > { %v1924_v55 = vpop.f32.mrb[7].mxu1 }
 0x258   : > { %v709_v56 = vmax.f32 %v1922_v54, %v1924_v55 }
 0x25a   : > { %710 = vmax.xlane.f32.xlu1 %v709_v56  ;;  %v1928_v57 = vpop.f32.mrb[8].mxu1 }
 0x25b   : > { %v1930_v58 = vpop.f32.mrb[9].mxu1 }
 0x25c   : > { %v712_v59 = vmax.f32 %v1928_v57, %v1930_v58 }
 0x25e   : > { %713 = vmax.xlane.f32.xlu1 %v712_v59  ;;  %v1934_v60 = vpop.f32.mrb[10].mxu1 }
 0x25f   : > { %v1936_v61 = vpop.f32.mrb[11].mxu1 }
 0x260   : > { %v715_v62 = vmax.f32 %v1934_v60, %v1936_v61 }
 0x262   : > { %716 = vmax.xlane.f32.xlu1 %v715_v62  ;;  %v1940_v63 = vpop.f32.mrb[12].mxu1 }
 0x263   : > { %v1942_v0 = vpop.f32.mrb[13].mxu1 }
 0x264   : > { %v718_v1 = vmax.f32 %v1940_v63, %v1942_v0 }
 0x266   : > { %719 = vmax.xlane.f32.xlu1 %v718_v1  ;;  %v1946_v2 = vpop.f32.mrb[14].mxu1 }
 0x267   : > { %v1948_v3 = vpop.f32.mrb[15].mxu1 }
 0x268   : > { %v721_v4 = vmax.f32 %v1946_v2, %v1948_v3 }
 0x26a   : > { %722 = vmax.xlane.f32.xlu1 %v721_v4  ;;  %v1952_v5 = vpop.f32.mrb[16].mxu1 }
 0x26b   : > { %v1954_v6 = vpop.f32.mrb[17].mxu1 }
 0x26c   : > { %v724_v7 = vmax.f32 %v1952_v5, %v1954_v6 }
 0x26e   : > { %725 = vmax.xlane.f32.xlu1 %v724_v7  ;;  %v1958_v8 = vpop.f32.mrb[18].mxu1 }
 0x26f   : > { %v1960_v9 = vpop.f32.mrb[19].mxu1 }
 0x270   : > { %v727_v10 = vmax.f32 %v1958_v8, %v1960_v9 }
 0x272   : > { %728 = vmax.xlane.f32.xlu1 %v727_v10  ;;  %v1964_v11 = vpop.f32.mrb[20].mxu1 }
 0x273   : > { %v1966_v12 = vpop.f32.mrb[21].mxu1 }
 0x274   : > { %v730_v13 = vmax.f32 %v1964_v11, %v1966_v12 }
 0x276   : > { %731 = vmax.xlane.f32.xlu1 %v730_v13  ;;  %v1970_v14 = vpop.f32.mrb[22].mxu1 }
 0x277   : > { %v1972_v15 = vpop.f32.mrb[23].mxu1 }
 0x278   : > { %v733_v16 = vmax.f32 %v1970_v14, %v1972_v15 }
 0x27a   : > { %734 = vmax.xlane.f32.xlu0 %v733_v16  ;;  %v1976_v17 = vpop.f32.mrb[24].mxu1 }
 0x27b   : > { %v1978_v18 = vpop.f32.mrb[25].mxu1 }
 0x27c   : > { %v736_v19 = vmax.f32 %v1976_v17, %v1978_v18 }
 0x27e   : > { %737 = vmax.xlane.f32.xlu1 %v736_v19  ;;  %v1982_v20 = vpop.f32.mrb[26].mxu1 }
 0x27f   : > { %v1984_v21 = vpop.f32.mrb[27].mxu1 }
 0x280   : > { %v739_v22 = vmax.f32 %v1982_v20, %v1984_v21 }
 0x282   : > { %740 = vmax.xlane.f32.xlu0 %v739_v22  ;;  %v1988_v23 = vpop.f32.mrb[28].mxu1 }
 0x283   : > { %v1990_v24 = vpop.f32.mrb[29].mxu1 }
 0x284   : > { %v742_v25 = vmax.f32 %v1988_v23, %v1990_v24 }
 0x286   : > { %743 = vmax.xlane.f32.xlu1 %v742_v25  ;;  %v1994_v26 = vpop.f32.mrb[30].mxu1 }
 0x287   : > { %v1996_v27 = vpop.f32.mrb[31].mxu1 }
 0x288   : > { %v745_v28 = vmax.f32 %v1994_v26, %v1996_v27 }
 0x28a   : > { %746 = vmax.xlane.f32.xlu0 %v745_v28  ;;  %v2000_v29 = vpop.f32.mrb[32].mxu1 }
 0x28b   : > { %v2002_v30 = vpop.f32.mrb[33].mxu1 }
 0x28c   : > { %v748_v31 = vmax.f32 %v2000_v29, %v2002_v30 }
 0x28e   : > { %749 = vmax.xlane.f32.xlu1 %v748_v31  ;;  %v2006_v32 = vpop.f32.mrb[34].mxu1 }
 0x28f   : > { %v2008_v33 = vpop.f32.mrb[35].mxu1 }
 0x290   : > { %2534 = vst [vmem:[#allocation5_spill] sm:$0xff] %v2008_v33  ;;  %v751_v34 = vmax.f32 %v2006_v32, %v2008_v33 }
 0x292   : > { %752 = vmax.xlane.f32.xlu0 %v751_v34  ;;  %v2012_v35 = vpop.f32.mrb[36].mxu1 }
 0x293   : > { %2535 = vst [vmem:[#allocation6_spill] sm:$0xff] %v2012_v35  ;;  %v2014_v36 = vpop.f32.mrb[37].mxu1 }
 0x294   : > { %2536 = vst [vmem:[#allocation7_spill] sm:$0xff] %v2014_v36  ;;  %v754_v37 = vmax.f32 %v2012_v35, %v2014_v36 }
 0x296   : > { %755 = vmax.xlane.f32.xlu1 %v754_v37  ;;  %v2018_v38 = vpop.f32.mrb[38].mxu1 }
 0x297   : > { %2537 = vst [vmem:[#allocation8_spill] sm:$0xff] %v2018_v38  ;;  %v2020_v39 = vpop.f32.mrb[39].mxu1 }
 0x298   : > { %2538 = vst [vmem:[#allocation9_spill] sm:$0xff] %v2020_v39  ;;  %v757_v40 = vmax.f32 %v2018_v38, %v2020_v39 }
 0x29a   : > { %758 = vmax.xlane.f32.xlu0 %v757_v40  ;;  %v2024_v41 = vpop.f32.mrb[40].mxu1 }
 0x29b   : > { %2539 = vst [vmem:[#allocation10_spill] sm:$0xff] %v2024_v41  ;;  %v2026_v42 = vpop.f32.mrb[41].mxu1 }
 0x29c   : > { %2540 = vst [vmem:[#allocation11_spill] sm:$0xff] %v2026_v42  ;;  %v760_v43 = vmax.f32 %v2024_v41, %v2026_v42 }
 0x29e   : > { %761 = vmax.xlane.f32.xlu1 %v760_v43  ;;  %v2030_v44 = vpop.f32.mrb[42].mxu1 }
 0x29f   : > { %2541 = vst [vmem:[#allocation12_spill] sm:$0xff] %v2030_v44  ;;  %v2032_v47 = vpop.f32.mrb[43].mxu1 }
 0x2a0   : > { %2542 = vst [vmem:[#allocation13_spill] sm:$0xff] %v2032_v47  ;;  %v763_v50 = vmax.f32 %v2030_v44, %v2032_v47 }
 0x2a2   : > { %764 = vmax.xlane.f32.xlu0 %v763_v50  ;;  %v2036_v53 = vpop.f32.mrb[44].mxu1 }
 0x2a3   : > { %2543 = vst [vmem:[#allocation14_spill] sm:$0xff] %v2036_v53  ;;  %v2038_v56 = vpop.f32.mrb[45].mxu1 }
 0x2a4   : > { %2544 = vst [vmem:[#allocation15_spill] sm:$0xff] %v2038_v56  ;;  %v766_v59 = vmax.f32 %v2036_v53, %v2038_v56  ;;  %v171_v53 = vld [vmem:[%s2502_s1 + $0x8] sm:$0xf] }
 0x2a5   : > { %1341 = vmatmul.mubr.msk.f32.gmra.mrb[2].mxu0 %vm186_vm1, %v171_v53 }
 0x2a6   : > { %767 = vmax.xlane.f32.xlu1 %v766_v59  ;;  %v2042_v62 = vpop.f32.mrb[46].mxu1 }
 0x2a7   : > { %2545 = vst [vmem:[#allocation16_spill] sm:$0xff] %v2042_v62  ;;  %v2044_v1 = vpop.f32.mrb[47].mxu1 }
 0x2a8   : > { %2546 = vst [vmem:[#allocation17_spill] sm:$0xff] %v2044_v1  ;;  %v769_v4 = vmax.f32 %v2042_v62, %v2044_v1 }
 0x2aa   : > { %770 = vmax.xlane.f32.xlu0 %v769_v4  ;;  %v2048_v7 = vpop.f32.mrb[48].mxu1 }
 0x2ab   : > { %v2050_v10 = vpop.f32.mrb[49].mxu1 }
 0x2ae   : > { %v2054_v16 = vpop.f32.mrb[50].mxu1 }
 0x2af   : > { %v2056_v19 = vpop.f32.mrb[51].mxu1 }
 0x2b2   : > { %v2060_v25 = vpop.f32.mrb[52].mxu1 }
 0x2b3   : > { %v2062_v28 = vpop.f32.mrb[53].mxu1 }
 0x2b6   : > { %v2066_v34 = vpop.f32.mrb[54].mxu1 }
 0x2b7   : > { %v2068_v37 = vpop.f32.mrb[55].mxu1 }
 0x2ba   : > { %v2072_v43 = vpop.f32.mrb[56].mxu1 }
 0x2bb   : > { %v2074_v50 = vpop.f32.mrb[57].mxu1 }
 0x2be   : > { %v2078_v4 = vpop.f32.mrb[58].mxu1 }
 0x2bf   : > { %v2080_v22 = vpop.f32.mrb[59].mxu1 }
 0x2c2   : > { %v2084_v13 = vpop.f32.mrb[60].mxu1 }
 0x2c3   : > { %v2086_v1 = vpop.f32.mrb[61].mxu1 }
 0x2c6   : > { %v2090_v62 = vpop.f32.mrb[62].mxu1 }
 0x2c7   : > { %v2092_v56 = vpop.f32.mrb[63].mxu1 }
 0x2db   : > { %v702_v31 = vpop.xlane.xlu1 %701 }
 0x2dc   : > { %v796_v47 = vsub.f32 %v1904_v45, %v702_v31  ;;  %v797_v44 = vsub.f32 %v1906_v46, %v702_v31 }
 0x2de   : > { %v860_v42 = vmul.f32 1.442695, %v796_v47  ;;  %v862_v40 = vmul.f32 1.442695, %v797_v44 }
 0x2df   : > { %v705_v41 = vpop.xlane.xlu0 %704 }
 0x2e0   : > { %1491 = vpow2.f32 %v860_v42  ;;  %v798_v39 = vsub.f32 %v1910_v48, %v705_v41  ;;  %v799_v38 = vsub.f32 %v1912_v49, %v705_v41 }
 0x2e1   : > { %1493 = vpow2.f32 %v862_v40 }
 0x2e2   : > { %v864_v59 = vmul.f32 1.442695, %v798_v39  ;;  %v866_v36 = vmul.f32 1.442695, %v799_v38 }
 0x2e3   : > { %v708_v35 = vpop.xlane.xlu1 %707 }
 0x2e4   : > { %1495 = vpow2.f32 %v864_v59  ;;  %v800_v53 = vsub.f32 %v1916_v51, %v708_v35  ;;  %v801_v33 = vsub.f32 %v1918_v52, %v708_v35 }
 0x2e5   : > { %1497 = vpow2.f32 %v866_v36 }
 0x2e6   : > { %v868_v45 = vmul.f32 1.442695, %v800_v53  ;;  %v870_v46 = vmul.f32 1.442695, %v801_v33 }
 0x2e7   : > { %v711_v47 = vpop.xlane.xlu1 %710 }
 0x2e8   : > { %1499 = vpow2.f32 %v868_v45  ;;  %v802_v42 = vsub.f32 %v1922_v54, %v711_v47  ;;  %v803_v48 = vsub.f32 %v1924_v55, %v711_v47 }
 0x2e9   : > { %1501 = vpow2.f32 %v870_v46  ;;  %v2547_v46 = vmax.f32 %v2048_v7, %v2050_v10 }
 0x2ea   : > { %v2108_v49 = vpop.eup %1491  ;;  %v872_v39 = vmul.f32 1.442695, %v802_v42  ;;  %v874_v38 = vmul.f32 1.442695, %v803_v48 }
 0x2eb   : > { %v2110_v41 = vpop.eup %1493  ;;  %v714_v44 = vpop.xlane.xlu1 %713 }
 0x2ec   : > { %1503 = vpow2.f32 %v872_v39  ;;  %v804_v51 = vsub.f32 %v1928_v57, %v714_v44  ;;  %v805_v52 = vsub.f32 %v1930_v58, %v714_v44  ;;  %v988_v33 = vadd.f32 %v2110_v41, %v2108_v49 }
 0x2ed   : > { %1505 = vpow2.f32 %v874_v38 }
 0x2ee   : > { %v2116_v54 = vpop.eup %1495  ;;  %v876_v55 = vmul.f32 1.442695, %v804_v51  ;;  %v878_v35 = vmul.f32 1.442695, %v805_v52  ;;  %989 = vadd.xlane.f32.xlu1 %v988_v33  ;;  %v2548_v51 = vmax.f32 %v2054_v16, %v2056_v19 }
 0x2ef   : > { %v2118_v36 = vpop.eup %1497  ;;  %v717_v31 = vpop.xlane.xlu1 %716 }
 0x2f0   : > { %1507 = vpow2.f32 %v876_v55  ;;  %v806_v40 = vsub.f32 %v1934_v60, %v717_v31  ;;  %v807_v59 = vsub.f32 %v1936_v61, %v717_v31  ;;  %v991_v57 = vadd.f32 %v2118_v36, %v2116_v54 }
 0x2f1   : > { %1509 = vpow2.f32 %v878_v35 }
 0x2f2   : > { %v2124_v58 = vpop.eup %1499  ;;  %v880_v53 = vmul.f32 1.442695, %v806_v40  ;;  %v882_v45 = vmul.f32 1.442695, %v807_v59  ;;  %992 = vadd.xlane.f32.xlu0 %v991_v57  ;;  %773 = vmax.xlane.f32.xlu1 %v2547_v46  ;;  %v2549_v59 = vmax.f32 %v2060_v25, %v2062_v28 }
 0x2f3   : > { %v2129_v47 = vpop.eup %1501  ;;  %v720_v42 = vpop.xlane.xlu1 %719 }
 0x2f4   : > { %1511 = vpow2.f32 %v880_v53  ;;  %v808_v60 = vsub.f32 %v1940_v63, %v720_v42  ;;  %v809_v61 = vsub.f32 %v1942_v0, %v720_v42  ;;  %v994_v48 = vadd.f32 %v2129_v47, %v2124_v58 }
 0x2f5   : > { %1513 = vpow2.f32 %v882_v45 }
 0x2f6   : > { %v2135_v39 = vpop.eup %1503  ;;  %v884_v38 = vmul.f32 1.442695, %v808_v60  ;;  %v886_v44 = vmul.f32 1.442695, %v809_v61  ;;  %995 = vadd.xlane.f32.xlu1 %v994_v48  ;;  %776 = vmax.xlane.f32.xlu0 %v2548_v51  ;;  %v2550_v61 = vmax.f32 %v2066_v34, %v2068_v37 }
 0x2f7   : > { %v2140_v52 = vpop.eup %1505  ;;  %v723_v33 = vpop.xlane.xlu1 %722 }
 0x2f8   : > { %1515 = vpow2.f32 %v884_v38  ;;  %v810_v63 = vsub.f32 %v1946_v2, %v723_v33  ;;  %v811_v0 = vsub.f32 %v1948_v3, %v723_v33  ;;  %v997_v55 = vadd.f32 %v2140_v52, %v2135_v39 }
 0x2f9   : > { %1517 = vpow2.f32 %v886_v44 }
 0x2fa   : > { %v2146_v35 = vpop.eup %1507  ;;  %v888_v31 = vmul.f32 1.442695, %v810_v63  ;;  %v890_v40 = vmul.f32 1.442695, %v811_v0  ;;  %998 = vadd.xlane.f32.xlu0 %v997_v55  ;;  %779 = vmax.xlane.f32.xlu1 %v2549_v59  ;;  %v2551_v0 = vmax.f32 %v2072_v43, %v2074_v50 }
 0x2fb   : > { %v2151_v57 = vpop.eup %1509  ;;  %v726_v53 = vpop.xlane.xlu1 %725 }
 0x2fc   : > { %1519 = vpow2.f32 %v888_v31  ;;  %v812_v2 = vsub.f32 %v1952_v5, %v726_v53  ;;  %v813_v3 = vsub.f32 %v1954_v6, %v726_v53  ;;  %v1000_v45 = vadd.f32 %v2151_v57, %v2146_v35 }
 0x2fd   : > { %1521 = vpow2.f32 %v890_v40 }
 0x2fe   : > { %v2157_v46 = vpop.eup %1511  ;;  %v892_v42 = vmul.f32 1.442695, %v812_v2  ;;  %v894_v60 = vmul.f32 1.442695, %v813_v3  ;;  %1001 = vadd.xlane.f32.xlu1 %v1000_v45  ;;  %782 = vmax.xlane.f32.xlu0 %v2550_v61  ;;  %v2552_v3 = vmax.f32 %v2078_v4, %v2080_v22 }
 0x2ff   : > { %v2162_v48 = vpop.eup %1513  ;;  %v729_v38 = vpop.xlane.xlu1 %728 }
 0x300   : > { %1523 = vpow2.f32 %v892_v42  ;;  %v814_v5 = vsub.f32 %v1958_v8, %v729_v38  ;;  %v815_v6 = vsub.f32 %v1960_v9, %v729_v38  ;;  %v1003_v44 = vadd.f32 %v2162_v48, %v2157_v46 }
 0x301   : > { %1525 = vpow2.f32 %v894_v60 }
 0x302   : > { %v2168_v51 = vpop.eup %1515  ;;  %v896_v33 = vmul.f32 1.442695, %v814_v5  ;;  %v898_v63 = vmul.f32 1.442695, %v815_v6  ;;  %1004 = vadd.xlane.f32.xlu0 %v1003_v44  ;;  %785 = vmax.xlane.f32.xlu1 %v2551_v0  ;;  %v2553_v6 = vmax.f32 %v2084_v13, %v2086_v1 }
 0x303   : > { %v2173_v55 = vpop.eup %1517  ;;  %v732_v31 = vpop.xlane.xlu1 %731 }
 0x304   : > { %1527 = vpow2.f32 %v896_v33  ;;  %v816_v8 = vsub.f32 %v1964_v11, %v732_v31  ;;  %v817_v9 = vsub.f32 %v1966_v12, %v732_v31  ;;  %v1006_v40 = vadd.f32 %v2173_v55, %v2168_v51 }
 0x305   : > { %1529 = vpow2.f32 %v898_v63 }
 0x306   : > { %v2179_v59 = vpop.eup %1519  ;;  %v900_v53 = vmul.f32 1.442695, %v816_v8  ;;  %v902_v2 = vmul.f32 1.442695, %v817_v9  ;;  %1007 = vadd.xlane.f32.xlu1 %v1006_v40  ;;  %788 = vmax.xlane.f32.xlu0 %v2552_v3  ;;  %v2554_v9 = vmax.f32 %v2090_v62, %v2092_v56 }
 0x307   : > { %v2184_v45 = vpop.eup %1521  ;;  %v735_v42 = vpop.xlane.xlu0 %734 }
 0x308   : > { %1531 = vpow2.f32 %v900_v53  ;;  %v818_v11 = vsub.f32 %v1970_v14, %v735_v42  ;;  %v819_v12 = vsub.f32 %v1972_v15, %v735_v42  ;;  %v1009_v60 = vadd.f32 %v2184_v45, %v2179_v59 }
 0x309   : > { %1533 = vpow2.f32 %v902_v2 }
 0x30a   : > { %v2190_v61 = vpop.eup %1523  ;;  %v904_v38 = vmul.f32 1.442695, %v818_v11  ;;  %v906_v5 = vmul.f32 1.442695, %v819_v12  ;;  %1010 = vadd.xlane.f32.xlu0 %v1009_v60  ;;  %791 = vmax.xlane.f32.xlu1 %v2553_v6 }
 0x30b   : > { %v2195_v44 = vpop.eup %1525  ;;  %v738_v33 = vpop.xlane.xlu1 %737 }
 0x30c   : > { %1535 = vpow2.f32 %v904_v38  ;;  %v820_v14 = vsub.f32 %v1976_v17, %v738_v33  ;;  %v821_v15 = vsub.f32 %v1978_v18, %v738_v33  ;;  %v1012_v63 = vadd.f32 %v2195_v44, %v2190_v61 }
 0x30d   : > { %1537 = vpow2.f32 %v906_v5 }
 0x30e   : > { %v2201_v0 = vpop.eup %1527  ;;  %v908_v31 = vmul.f32 1.442695, %v820_v14  ;;  %v910_v8 = vmul.f32 1.442695, %v821_v15  ;;  %1013 = vadd.xlane.f32.xlu1 %v1012_v63  ;;  %794 = vmax.xlane.f32.xlu0 %v2554_v9 }
 0x30f   : > { %v2206_v40 = vpop.eup %1529  ;;  %v741_v53 = vpop.xlane.xlu0 %740 }
 0x310   : > { %1539 = vpow2.f32 %v908_v31  ;;  %v822_v17 = vsub.f32 %v1982_v20, %v741_v53  ;;  %v823_v18 = vsub.f32 %v1984_v21, %v741_v53  ;;  %v1015_v2 = vadd.f32 %v2206_v40, %v2201_v0 }
 0x311   : > { %1541 = vpow2.f32 %v910_v8 }
 0x312   : > { %v2212_v3 = vpop.eup %1531  ;;  %v912_v42 = vmul.f32 1.442695, %v822_v17  ;;  %v914_v11 = vmul.f32 1.442695, %v823_v18  ;;  %1016 = vadd.xlane.f32.xlu0 %v1015_v2 }
 0x313   : > { %v2214_v12 = vpop.eup %1533  ;;  %v744_v60 = vpop.xlane.xlu1 %743 }
 0x314   : > { %1543 = vpow2.f32 %v912_v42  ;;  %v824_v38 = vsub.f32 %v1988_v23, %v744_v60  ;;  %v825_v5 = vsub.f32 %v1990_v24, %v744_v60  ;;  %v1018_v20 = vadd.f32 %v2214_v12, %v2212_v3 }
 0x315   : > { %1545 = vpow2.f32 %v914_v11 }
 0x316   : > { %v2220_v21 = vpop.eup %1535  ;;  %v916_v6 = vmul.f32 1.442695, %v824_v38  ;;  %v918_v33 = vmul.f32 1.442695, %v825_v5  ;;  %1019 = vadd.xlane.f32.xlu1 %v1018_v20  ;;  %v2555_v20 = vld [vmem:[#allocation5_spill] sm:$0xff] }
 0x317   : > { %v2222_v14 = vpop.eup %1537  ;;  %v747_v15 = vpop.xlane.xlu0 %746 }
 0x318   : > { %1547 = vpow2.f32 %v916_v6  ;;  %v826_v63 = vsub.f32 %v1994_v26, %v747_v15  ;;  %v827_v31 = vsub.f32 %v1996_v27, %v747_v15  ;;  %v1021_v23 = vadd.f32 %v2222_v14, %v2220_v21 }
 0x319   : > { %1549 = vpow2.f32 %v918_v33 }
 0x31a   : > { %v2228_v24 = vpop.eup %1539  ;;  %v920_v8 = vmul.f32 1.442695, %v826_v63  ;;  %v922_v9 = vmul.f32 1.442695, %v827_v31  ;;  %1022 = vadd.xlane.f32.xlu0 %v1021_v23  ;;  %v2557_v23 = vld [vmem:[#allocation6_spill] sm:$0xff] }
 0x31b   : > { %v2230_v53 = vpop.eup %1541  ;;  %v750_v17 = vpop.xlane.xlu1 %749 }
 0x31c   : > { %1551 = vpow2.f32 %v920_v8  ;;  %v828_v18 = vsub.f32 %v2000_v29, %v750_v17  ;;  %v829_v2 = vsub.f32 %v2002_v30, %v750_v17  ;;  %v1024_v26 = vadd.f32 %v2230_v53, %v2228_v24 }
 0x31d   : > { %1553 = vpow2.f32 %v922_v9  ;;  %v2558_v9 = vld [vmem:[#allocation7_spill] sm:$0xff] }
 0x31e   : > { %v2236_v27 = vpop.eup %1543  ;;  %v924_v42 = vmul.f32 1.442695, %v828_v18  ;;  %v926_v11 = vmul.f32 1.442695, %v829_v2  ;;  %1025 = vadd.xlane.f32.xlu1 %v1024_v26 }
 0x31f   : > { %v2238_v60 = vpop.eup %1545  ;;  %v753_v38 = vpop.xlane.xlu0 %752 }
 0x320   : > { %1555 = vpow2.f32 %v924_v42  ;;  %v830_v5 = vsub.f32 %v2006_v32, %v753_v38  ;;  %v831_v6 = vsub.f32 %v2555_v20, %v753_v38  ;;  %v1027_v29 = vadd.f32 %v2238_v60, %v2236_v27  ;;  %v2560_v38 = vld [vmem:[#allocation8_spill] sm:$0xff]  ;;  %v2561_v20 = vld [vmem:[#allocation9_spill] sm:$0xff] }
 0x321   : > { %1557 = vpow2.f32 %v926_v11 }
 0x322   : > { %v2244_v30 = vpop.eup %1547  ;;  %v928_v33 = vmul.f32 1.442695, %v830_v5  ;;  %v930_v15 = vmul.f32 1.442695, %v831_v6  ;;  %1028 = vadd.xlane.f32.xlu0 %v1027_v29 }
 0x323   : > { %2556 = vst [vmem:[#allocation5_spill] sm:$0xff] %v2244_v30  ;;  %v2246_v63 = vpop.eup %1549  ;;  %v756_v31 = vpop.xlane.xlu1 %755 }
 0x324   : > { %1559 = vpow2.f32 %v928_v33  ;;  %v832_v8 = vsub.f32 %v2557_v23, %v756_v31  ;;  %v833_v17 = vsub.f32 %v2558_v9, %v756_v31  ;;  %v1030_v32 = vadd.f32 %v2246_v63, %v2244_v30  ;;  %v2564_v9 = vld [vmem:[#allocation10_spill] sm:$0xff] }
 0x325   : > { %1561 = vpow2.f32 %v930_v15 }
 0x326   : > { %v2252_v18 = vpop.eup %1551  ;;  %v932_v2 = vmul.f32 1.442695, %v832_v8  ;;  %v934_v26 = vmul.f32 1.442695, %v833_v17  ;;  %1031 = vadd.xlane.f32.xlu1 %v1030_v32  ;;  %v2565_v32 = vld [vmem:[#allocation11_spill] sm:$0xff] }
 0x327   : > { %2559 = vst [vmem:[#allocation6_spill] sm:$0xff] %v2252_v18  ;;  %v2254_v42 = vpop.eup %1553  ;;  %v759_v11 = vpop.xlane.xlu0 %758 }
 0x328   : > { %1563 = vpow2.f32 %v932_v2  ;;  %v834_v5 = vsub.f32 %v2560_v38, %v759_v11  ;;  %v835_v6 = vsub.f32 %v2561_v20, %v759_v11  ;;  %v1033_v29 = vadd.f32 %v2254_v42, %v2252_v18 }
 0x329   : > { %1565 = vpow2.f32 %v934_v26 }
 0x32a   : > { %v2260_v33 = vpop.eup %1555  ;;  %v936_v15 = vmul.f32 1.442695, %v834_v5  ;;  %v938_v31 = vmul.f32 1.442695, %v835_v6  ;;  %1034 = vadd.xlane.f32.xlu0 %v1033_v29  ;;  %v2568_v29 = vld [vmem:[#allocation12_spill] sm:$0xff] }
 0x32b   : > { %2562 = vst [vmem:[#allocation7_spill] sm:$0xff] %v2260_v33  ;;  %v2262_v23 = vpop.eup %1557  ;;  %v762_v8 = vpop.xlane.xlu1 %761 }
 0x32c   : > { %2563 = vst [vmem:[#allocation8_spill] sm:$0xff] %v2262_v23  ;;  %1567 = vpow2.f32 %v936_v15  ;;  %v836_v17 = vsub.f32 %v2564_v9, %v762_v8  ;;  %v837_v2 = vsub.f32 %v2565_v32, %v762_v8  ;;  %v1036_v11 = vadd.f32 %v2262_v23, %v2260_v33  ;;  %v2569_v15 = vld [vmem:[#allocation13_spill] sm:$0xff] }
 0x32d   : > { %1569 = vpow2.f32 %v938_v31 }
 0x32e   : > { %v2268_v38 = vpop.eup %1559  ;;  %v940_v26 = vmul.f32 1.442695, %v836_v17  ;;  %v942_v20 = vmul.f32 1.442695, %v837_v2  ;;  %1037 = vadd.xlane.f32.xlu1 %v1036_v11  ;;  %v2570_v11 = vld [vmem:[#allocation14_spill] sm:$0xff] }
 0x32f   : > { %2566 = vst [vmem:[#allocation9_spill] sm:$0xff] %v2268_v38  ;;  %v2270_v5 = vpop.eup %1561  ;;  %v765_v6 = vpop.xlane.xlu0 %764 }
 0x330   : > { %2567 = vst [vmem:[#allocation10_spill] sm:$0xff] %v2270_v5  ;;  %1571 = vpow2.f32 %v940_v26  ;;  %v838_v30 = vsub.f32 %v2568_v29, %v765_v6  ;;  %v839_v18 = vsub.f32 %v2569_v15, %v765_v6  ;;  %v1039_v8 = vadd.f32 %v2270_v5, %v2268_v38  ;;  %v2571_v26 = vld [vmem:[#allocation15_spill] sm:$0xff] }
 0x331   : > { %1573 = vpow2.f32 %v942_v20 }
 0x332   : > { %v2276_v9 = vpop.eup %1563  ;;  %v944_v31 = vmul.f32 1.442695, %v838_v30  ;;  %v946_v32 = vmul.f32 1.442695, %v839_v18  ;;  %1040 = vadd.xlane.f32.xlu0 %v1039_v8  ;;  %v2572_v8 = vld [vmem:[#allocation16_spill] sm:$0xff] }
 0x333   : > { %v2278_v17 = vpop.eup %1565  ;;  %v768_v2 = vpop.xlane.xlu1 %767 }
 0x334   : > { %1575 = vpow2.f32 %v944_v31  ;;  %v840_v33 = vsub.f32 %v2570_v11, %v768_v2  ;;  %v841_v23 = vsub.f32 %v2571_v26, %v768_v2  ;;  %v1042_v6 = vadd.f32 %v2278_v17, %v2276_v9  ;;  %v2573_v31 = vld [vmem:[#allocation17_spill] sm:$0xff] }
 0x335   : > { %1577 = vpow2.f32 %v946_v32 }
 0x336   : > { %v2284_v29 = vpop.eup %1567  ;;  %v948_v20 = vmul.f32 1.442695, %v840_v33  ;;  %v950_v15 = vmul.f32 1.442695, %v841_v23  ;;  %1043 = vadd.xlane.f32.xlu1 %v1042_v6 }
 0x337   : > { %v2286_v30 = vpop.eup %1569  ;;  %v771_v18 = vpop.xlane.xlu0 %770 }
 0x338   : > { %1579 = vpow2.f32 %v948_v20  ;;  %v842_v38 = vsub.f32 %v2572_v8, %v771_v18  ;;  %v843_v5 = vsub.f32 %v2573_v31, %v771_v18  ;;  %v1045_v2 = vadd.f32 %v2286_v30, %v2284_v29 }
 0x339   : > { %1581 = vpow2.f32 %v950_v15 }
 0x33a   : > { %v2292_v11 = vpop.eup %1571  ;;  %v952_v32 = vmul.f32 1.442695, %v842_v38  ;;  %v954_v26 = vmul.f32 1.442695, %v843_v5  ;;  %1046 = vadd.xlane.f32.xlu0 %v1045_v2 }
 0x33b   : > { %2574 = vst [vmem:[#allocation11_spill] sm:$0xff] %v2292_v11  ;;  %v2294_v33 = vpop.eup %1573 }
 0x33c   : > { %2575 = vst [vmem:[#allocation12_spill] sm:$0xff] %v2294_v33  ;;  %1583 = vpow2.f32 %v952_v32  ;;  %v1048_v23 = vadd.f32 %v2294_v33, %v2292_v11 }
 0x33d   : > { %1585 = vpow2.f32 %v954_v26 }
 0x33e   : > { %v2298_v6 = vpop.eup %1575  ;;  %1049 = vadd.xlane.f32.xlu1 %v1048_v23 }
 0x33f   : > { %2576 = vst [vmem:[#allocation13_spill] sm:$0xff] %v2298_v6  ;;  %v2300_v20 = vpop.eup %1577 }
 0x340   : > { %2577 = vst [vmem:[#allocation14_spill] sm:$0xff] %v2300_v20  ;;  %v1051_v15 = vadd.f32 %v2300_v20, %v2298_v6 }
 0x342   : > { %v2304_v18 = vpop.eup %1579  ;;  %1052 = vadd.xlane.f32.xlu0 %v1051_v15 }
 0x343   : > { %2578 = vst [vmem:[#allocation15_spill] sm:$0xff] %v2304_v18  ;;  %v2306_v38 = vpop.eup %1581 }
 0x344   : > { %2579 = vst [vmem:[#allocation16_spill] sm:$0xff] %v2306_v38  ;;  %v1054_v5 = vadd.f32 %v2306_v38, %v2304_v18 }
 0x346   : > { %v2310_v8 = vpop.eup %1583  ;;  %1055 = vadd.xlane.f32.xlu1 %v1054_v5 }
 0x347   : > { %2580 = vst [vmem:[#allocation17_spill] sm:$0xff] %v2310_v8  ;;  %v2312_v31 = vpop.eup %1585 }
 0x348   : > { %2581 = vst [vmem:[#allocation18_spill] sm:$0xff] %v2312_v31  ;;  %v1057_v2 = vadd.f32 %v2312_v31, %v2310_v8 }
 0x34a   : > { %1058 = vadd.xlane.f32.xlu0 %v1057_v2 }
 0x37b   : > { %v990_v32 = vpop.xlane.xlu1 %989 }
 0x37c   : > { %1587 = vrcp.f32 %v990_v32 }
 0x37f   : > { %v993_v26 = vpop.xlane.xlu0 %992  ;;  %v774_v23 = vpop.xlane.xlu1 %773 }
 0x380   : > { %1589 = vrcp.f32 %v993_v26  ;;  %v844_v15 = vsub.f32 %v2048_v7, %v774_v23  ;;  %v845_v11 = vsub.f32 %v2050_v10, %v774_v23 }
 0x382   : > { %v956_v6 = vmul.f32 1.442695, %v844_v15  ;;  %v958_v18 = vmul.f32 1.442695, %v845_v11 }
 0x383   : > { %v996_v38 = vpop.xlane.xlu1 %995  ;;  %v777_v20 = vpop.xlane.xlu0 %776 }
 0x384   : > { %1591 = vpow2.f32 %v956_v6  ;;  %v846_v5 = vsub.f32 %v2054_v16, %v777_v20  ;;  %v847_v33 = vsub.f32 %v2056_v19, %v777_v20 }
 0x385   : > { %1593 = vpow2.f32 %v958_v18 }
 0x386   : > { %1595 = vrcp.f32 %v996_v38  ;;  %v960_v2 = vmul.f32 1.442695, %v846_v5  ;;  %v962_v32 = vmul.f32 1.442695, %v847_v33  ;;  %v1588_v26 = vpop.eup %1587 }
 0x387   : > { %v999_v8 = vpop.xlane.xlu0 %998  ;;  %v780_v31 = vpop.xlane.xlu1 %779  ;;  %v1117_v19 = vmul.f32 %v1588_v26, %v2110_v41  ;;  %v1116_v33 = vmul.f32 %v1588_v26, %v2108_v49 }
 0x388   : > { %1597 = vpow2.f32 %v960_v2  ;;  %v848_v7 = vsub.f32 %v2060_v25, %v780_v31  ;;  %v849_v10 = vsub.f32 %v2062_v28, %v780_v31 }
 0x389   : > { %1599 = vpow2.f32 %v962_v32 }
 0x38a   : > { %v1590_v11 = vpop.eup %1589  ;;  %1601 = vrcp.f32 %v999_v8  ;;  %v964_v6 = vmul.f32 1.442695, %v848_v7  ;;  %v966_v23 = vmul.f32 1.442695, %v849_v10 }
 0x38b   : > { %v1002_v16 = vpop.xlane.xlu1 %1001  ;;  %v783_v15 = vpop.xlane.xlu0 %782  ;;  %v1119_v20 = vmul.f32 %v1590_v11, %v2118_v36  ;;  %v1118_v18 = vmul.f32 %v1590_v11, %v2116_v54 }
 0x38c   : > { %1603 = vpow2.f32 %v964_v6  ;;  %v850_v25 = vsub.f32 %v2066_v34, %v783_v15  ;;  %v851_v28 = vsub.f32 %v2068_v37, %v783_v15 }
 0x38d   : > { %1605 = vpow2.f32 %v966_v23  ;;  %v1383_v38 = vpack.c.bf16 %v1119_v20, %v1117_v19  ;;  %v1385_v8 = vpack.c.bf16 %v1118_v18, %v1116_v33 }
 0x38e   : > { %v2328_v31 = vpop.eup %1591  ;;  %1607 = vrcp.f32 %v1002_v16  ;;  %v968_v5 = vmul.f32 1.442695, %v850_v25  ;;  %v970_v2 = vmul.f32 1.442695, %v851_v28 }
 0x38f   : > { %v2330_v41 = vpop.eup %1593  ;;  %1384 = vmatprep.subr.bf16.mxu0 %v1383_v38  ;;  %v1005_v36 = vpop.xlane.xlu0 %1004 }
 0x390   : > { %v786_v49 = vpop.xlane.xlu1 %785  ;;  %v1596_v32 = vpop.eup %1595  ;;  %1609 = vpow2.f32 %v968_v5  ;;  %1386 = vmatpush1.bf16.xpose.msra.mxu0 %v1385_v8  ;;  %v1060_v37 = vadd.f32 %v2330_v41, %v2328_v31 }
 0x391   : > { %v852_v54 = vsub.f32 %v2072_v43, %v786_v49  ;;  %v853_v34 = vsub.f32 %v2074_v50, %v786_v49  ;;  %1611 = vpow2.f32 %v970_v2  ;;  %v1121_v16 = vmul.f32 %v1596_v32, %v2129_v47 }
 0x392   : > { %v2336_v26 = vpop.eup %1597  ;;  %1613 = vrcp.f32 %v1005_v36  ;;  %1061 = vadd.xlane.f32.xlu1 %v1060_v37  ;;  %v1120_v33 = vmul.f32 %v1596_v32, %v2124_v58 }
 0x393   : > { %v972_v7 = vmul.f32 1.442695, %v852_v54  ;;  %v974_v10 = vmul.f32 1.442695, %v853_v34  ;;  %v2338_v11 = vpop.eup %1599  ;;  %v789_v23 = vpop.xlane.xlu0 %788 }
 0x394   : > { %v1008_v6 = vpop.xlane.xlu1 %1007  ;;  %v1602_v43 = vpop.eup %1601  ;;  %v854_v50 = vsub.f32 %v2078_v4, %v789_v23  ;;  %v855_v15 = vsub.f32 %v2080_v22, %v789_v23  ;;  %v1063_v19 = vadd.f32 %v2338_v11, %v2336_v26 }
 0x395   : > { %1615 = vpow2.f32 %v972_v7  ;;  %v1123_v20 = vmul.f32 %v1602_v43, %v2140_v52  ;;  %v1122_v18 = vmul.f32 %v1602_v43, %v2135_v39 }
 0x396   : > { %1617 = vpow2.f32 %v974_v10  ;;  %v2348_v25 = vpop.eup %1603  ;;  %v976_v28 = vmul.f32 1.442695, %v854_v50  ;;  %v978_v47 = vmul.f32 1.442695, %v855_v15  ;;  %1064 = vadd.xlane.f32.xlu0 %v1063_v19 }
 0x397   : > { %v2350_v38 = vpop.eup %1605  ;;  %1619 = vrcp.f32 %v1008_v6  ;;  %v1387_v4 = vpack.c.bf16 %v1123_v20, %v1121_v16  ;;  %v1011_v22 = vpop.xlane.xlu0 %1010  ;;  %v1389_v5 = vpack.c.bf16 %v1122_v18, %v1120_v33 }
 0x398   : > { %v792_v8 = vpop.xlane.xlu1 %791  ;;  %v1608_v2 = vpop.eup %1607  ;;  %1621 = vpow2.f32 %v976_v28  ;;  %v1066_v39 = vadd.f32 %v2350_v38, %v2348_v25 }
 0x399   : > { %v856_v52 = vsub.f32 %v2084_v13, %v792_v8  ;;  %v857_v58 = vsub.f32 %v2086_v1, %v792_v8  ;;  %1623 = vpow2.f32 %v978_v47  ;;  %1388 = vmatprep.subr.bf16.mxu0 %v1387_v4  ;;  %v1125_v37 = vmul.f32 %v1608_v2, %v2151_v57 }
 0x39a   : > { %v2356_v36 = vpop.eup %1609  ;;  %1625 = vrcp.f32 %v1011_v22  ;;  %1390 = vmatpush1.bf16.xpose.msra.mxu0 %v1389_v5  ;;  %1067 = vadd.xlane.f32.xlu1 %v1066_v39  ;;  %v1124_v16 = vmul.f32 %v1608_v2, %v2146_v35 }
 0x39b   : > { %v980_v49 = vmul.f32 1.442695, %v856_v52  ;;  %v982_v32 = vmul.f32 1.442695, %v857_v58  ;;  %v2358_v54 = vpop.eup %1611  ;;  %v795_v34 = vpop.xlane.xlu0 %794 }
 0x39c   : > { %v1614_v13 = vpop.eup %1613  ;;  %v1014_v1 = vpop.xlane.xlu1 %1013  ;;  %v858_v7 = vsub.f32 %v2090_v62, %v795_v34  ;;  %v859_v10 = vsub.f32 %v2092_v56, %v795_v34  ;;  %v1069_v6 = vadd.f32 %v2358_v54, %v2356_v36 }
 0x39d   : > { %1627 = vpow2.f32 %v980_v49  ;;  %v1127_v23 = vmul.f32 %v1614_v13, %v2162_v48  ;;  %v1126_v43 = vmul.f32 %v1614_v13, %v2157_v46 }
 0x39e   : > { %1629 = vpow2.f32 %v982_v32  ;;  %v984_v57 = vmul.f32 1.442695, %v858_v7  ;;  %v986_v15 = vmul.f32 1.442695, %v859_v10  ;;  %1070 = vadd.xlane.f32.xlu0 %v1069_v6 }
 0x39f   : > { %v2368_v50 = vpop.eup %1615  ;;  %1631 = vrcp.f32 %v1014_v1  ;;  %v1391_v62 = vpack.c.bf16 %v1127_v23, %v1125_v37  ;;  %v1017_v56 = vpop.xlane.xlu0 %1016  ;;  %v1393_v20 = vpack.c.bf16 %v1126_v43, %v1124_v16 }
 0x3a0   : > { %v2370_v19 = vpop.eup %1617  ;;  %1633 = vpow2.f32 %v984_v57 }
 0x3a1   : > { %v1072_v33 = vadd.f32 %v2370_v19, %v2368_v50  ;;  %v1620_v48 = vpop.eup %1619  ;;  %1635 = vpow2.f32 %v986_v15  ;;  %1392 = vmatprep.subr.bf16.mxu0 %v1391_v62 }
 0x3a2   : > { %v2374_v35 = vpop.eup %1621  ;;  %1637 = vrcp.f32 %v1017_v56  ;;  %1394 = vmatpush1.bf16.xpose.msra.mxu0 %v1393_v20  ;;  %v1129_v4 = vmul.f32 %v1620_v48, %v2173_v55  ;;  %v1128_v8 = vmul.f32 %v1620_v48, %v2168_v51  ;;  %v173_v48 = vld [vmem:[%s2503_s2 + $0x8] sm:$0xf] }
 0x3a3   : > { %1073 = vadd.xlane.f32.xlu1 %v1072_v33  ;;  %v2376_v46 = vpop.eup %1623  ;;  %v1020_v18 = vpop.xlane.xlu1 %1019 }
 0x3a4   : > { %v1626_v28 = vpop.eup %1625  ;;  %v1075_v47 = vadd.f32 %v2376_v46, %v2374_v35  ;;  %1639 = vrcp.f32 %v1020_v18 }
 0x3a5   : > { %v1131_v22 = vmul.f32 %v1626_v28, %v2184_v45  ;;  %v1130_v5 = vmul.f32 %v1626_v28, %v2179_v59 }
 0x3a6   : > { %1076 = vadd.xlane.f32.xlu0 %v1075_v47 }
 0x3a7   : > { %v2384_v2 = vpop.eup %1627  ;;  %v1395_v58 = vpack.c.bf16 %v1131_v22, %v1129_v4  ;;  %v1023_v39 = vpop.xlane.xlu0 %1022  ;;  %v1397_v49 = vpack.c.bf16 %v1130_v5, %v1128_v8 }
 0x3a8   : > { %v2386_v52 = vpop.eup %1629  ;;  %1641 = vrcp.f32 %v1023_v39 }
 0x3a9   : > { %v1078_v32 = vadd.f32 %v2386_v52, %v2384_v2  ;;  %v1632_v55 = vpop.eup %1631  ;;  %1396 = vmatprep.subr.bf16.mxu0 %v1395_v58 }
 0x3aa   : > { %v2390_v45 = vpop.eup %1633  ;;  %1398 = vmatpush1.bf16.xpose.msra.mxu0 %v1397_v49  ;;  %v1133_v13 = vmul.f32 %v1632_v55, %v2195_v44  ;;  %v1132_v7 = vmul.f32 %v1632_v55, %v2190_v61 }
 0x3ab   : > { %1079 = vadd.xlane.f32.xlu1 %v1078_v32  ;;  %v2392_v51 = vpop.eup %1635  ;;  %v1026_v59 = vpop.xlane.xlu1 %1025 }
 0x3ac   : > { %v1638_v34 = vpop.eup %1637  ;;  %v1081_v37 = vadd.f32 %v2392_v51, %v2390_v45  ;;  %1643 = vrcp.f32 %v1026_v59 }
 0x3ad   : > { %v1135_v1 = vmul.f32 %v1638_v34, %v2206_v40  ;;  %v1134_v10 = vmul.f32 %v1638_v34, %v2201_v0 }
 0x3ae   : > { %1082 = vadd.xlane.f32.xlu0 %v1081_v37  ;;  %v1640_v43 = vpop.eup %1639 }
 0x3af   : > { %v1399_v6 = vpack.c.bf16 %v1135_v1, %v1133_v13  ;;  %v1029_v23 = vpop.xlane.xlu0 %1028  ;;  %v1401_v16 = vpack.c.bf16 %v1134_v10, %v1132_v7  ;;  %v1137_v62 = vmul.f32 %v1640_v43, %v2214_v12  ;;  %v1136_v61 = vmul.f32 %v1640_v43, %v2212_v3  ;;  %v2584_v1 = vld [vmem:[#allocation8_spill] sm:$0xff]  ;;  %v2585_v10 = vld [vmem:[#allocation10_spill] sm:$0xff]  ;;  %v2419_v43 = vpop.f32.mrb[2].mxu0 }
 0x3b0   : > { %1645 = vrcp.f32 %v1029_v23  ;;  %v2587_v23 = vld [vmem:[#allocation7_spill] sm:$0xff] }
 0x3b1   : > { %1400 = vmatprep.subr.bf16.mxu0 %v1399_v6  ;;  %v2586_v6 = vld [vmem:[#allocation9_spill] sm:$0xff] }
 0x3b2   : > { %v1642_v57 = vpop.eup %1641  ;;  %1402 = vmatpush1.bf16.xpose.msra.mxu0 %v1401_v16 }
 0x3b3   : > { %v1032_v15 = vpop.xlane.xlu1 %1031  ;;  %v1139_v44 = vmul.f32 %v1642_v57, %v2222_v14  ;;  %v1138_v40 = vmul.f32 %v1642_v57, %v2220_v21 }
 0x3b4   : > { %1647 = vrcp.f32 %v1032_v15  ;;  %v2421_v15 = vpop.f32.mrb[3].mxu0 }
 0x3b5   : > { %v1403_v0 = vpack.c.bf16 %v1139_v44, %v1137_v62  ;;  %v1405_v56 = vpack.c.bf16 %v1138_v40, %v1136_v61 }
 0x3b6   : > { %v1644_v33 = vpop.eup %1643 }
 0x3b7   : > { %1404 = vmatprep.subr.bf16.mxu0 %v1403_v0  ;;  %v1035_v20 = vpop.xlane.xlu0 %1034  ;;  %v1141_v14 = vmul.f32 %v1644_v33, %v2230_v53  ;;  %v1140_v28 = vmul.f32 %v1644_v33, %v2228_v24 }
 0x3b8   : > { %1649 = vrcp.f32 %v1035_v20 }
 0x3ba   : > { %v1646_v18 = vpop.eup %1645  ;;  %1406 = vmatpush1.bf16.xpose.msra.mxu0 %v1405_v56 }
 0x3bb   : > { %v1038_v12 = vpop.xlane.xlu1 %1037  ;;  %v1143_v21 = vmul.f32 %v1646_v18, %v2238_v60  ;;  %v1142_v3 = vmul.f32 %v1646_v18, %v2236_v27  ;;  %v2582_v60 = vld [vmem:[#allocation6_spill] sm:$0xff]  ;;  %v2583_v27 = vld [vmem:[#allocation5_spill] sm:$0xff] }
 0x3bc   : > { %181 = vperm.xlu1 %1489, %v173_v48   ;;  %1651 = vrcp.f32 %v1038_v12 }
 0x3bd   : > { %v1407_v47 = vpack.c.bf16 %v1143_v21, %v1141_v14  ;;  %v1409_v4 = vpack.c.bf16 %v1142_v3, %v1140_v28  ;;  %v2588_v28 = vld [vmem:[#allocation12_spill] sm:$0xff] }
 0x3be   : > { %v1648_v8 = vpop.eup %1647 }
 0x3bf   : > { %1408 = vmatprep.subr.bf16.mxu0 %v1407_v47  ;;  %v1041_v22 = vpop.xlane.xlu0 %1040  ;;  %v1145_v39 = vmul.f32 %v1648_v8, %v2246_v63  ;;  %v1144_v32 = vmul.f32 %v1648_v8, %v2583_v27 }
 0x3c0   : > { %1653 = vrcp.f32 %v1041_v22 }
 0x3c2   : > { %v1650_v5 = vpop.eup %1649  ;;  %1410 = vmatpush1.bf16.xpose.msra.mxu0 %v1409_v4  ;;  %v2589_v4 = vld [vmem:[#allocation14_spill] sm:$0xff] }
 0x3c3   : > { %v1044_v58 = vpop.xlane.xlu1 %1043  ;;  %v1147_v53 = vmul.f32 %v1650_v5, %v2254_v42  ;;  %v1146_v49 = vmul.f32 %v1650_v5, %v2582_v60 }
 0x3c4   : > { %1655 = vrcp.f32 %v1044_v58 }
 0x3c5   : > { %v1411_v55 = vpack.c.bf16 %v1147_v53, %v1145_v39  ;;  %v1413_v24 = vpack.c.bf16 %v1146_v49, %v1144_v32  ;;  %v2592_v53 = vld [vmem:[#allocation16_spill] sm:$0xff]  ;;  %v2593_v49 = vld [vmem:[#allocation18_spill] sm:$0xff]  ;;  %v2594_v32 = vld [vmem:[#allocation17_spill] sm:$0xff] }
 0x3c6   : > { %v1652_v34 = vpop.eup %1651 }
 0x3c7   : > { %1412 = vmatprep.subr.bf16.mxu0 %v1411_v55  ;;  %v1047_v59 = vpop.xlane.xlu0 %1046  ;;  %v1149_v7 = vmul.f32 %v1652_v34, %v2584_v1  ;;  %v1148_v16 = vmul.f32 %v1652_v34, %v2587_v23 }
 0x3c8   : > { %1657 = vrcp.f32 %v1047_v59 }
 0x3ca   : > { %v1654_v37 = vpop.eup %1653  ;;  %1414 = vmatpush1.bf16.xpose.msra.mxu0 %v1413_v24  ;;  %v2595_v24 = vld [vmem:[#allocation15_spill] sm:$0xff] }
 0x3cb   : > { %v1050_v13 = vpop.xlane.xlu1 %1049  ;;  %v1151_v63 = vmul.f32 %v1654_v37, %v2585_v10  ;;  %v1150_v42 = vmul.f32 %v1654_v37, %v2586_v6 }
 0x3cc   : > { %1659 = vrcp.f32 %v1050_v13 }
 0x3cd   : > { %v1415_v57 = vpack.c.bf16 %v1151_v63, %v1149_v7  ;;  %v1417_v62 = vpack.c.bf16 %v1150_v42, %v1148_v16 }
 0x3ce   : > { %v1656_v40 = vpop.eup %1655 }
 0x3cf   : > { %1416 = vmatprep.subr.bf16.mxu0 %v1415_v57  ;;  %v1053_v44 = vpop.xlane.xlu0 %1052  ;;  %v1153_v56 = vmul.f32 %v1656_v40, %v2278_v17  ;;  %v1152_v48 = vmul.f32 %v1656_v40, %v2276_v9  ;;  %v2590_v17 = vld [vmem:[#allocation13_spill] sm:$0xff] }
 0x3d0   : > { %1661 = vrcp.f32 %v1053_v44 }
 0x3d2   : > { %v1658_v61 = vpop.eup %1657  ;;  %1418 = vmatpush1.bf16.xpose.msra.mxu0 %v1417_v62 }
 0x3d3   : > { %v1056_v0 = vpop.xlane.xlu1 %1055  ;;  %v1155_v20 = vmul.f32 %v1658_v61, %v2286_v30  ;;  %v1154_v33 = vmul.f32 %v1658_v61, %v2284_v29  ;;  %v2591_v30 = vld [vmem:[#allocation11_spill] sm:$0xff] }
 0x3d4   : > { %1663 = vrcp.f32 %v1056_v0 }
 0x3d5   : > { %v1419_v18 = vpack.c.bf16 %v1155_v20, %v1153_v56  ;;  %v1421_v12 = vpack.c.bf16 %v1154_v33, %v1152_v48 }
 0x3d6   : > { %v1660_v21 = vpop.eup %1659 }
 0x3d7   : > { %1420 = vmatprep.subr.bf16.mxu0 %v1419_v18  ;;  %v1059_v14 = vpop.xlane.xlu0 %1058  ;;  %v1157_v47 = vmul.f32 %v1660_v21, %v2588_v28  ;;  %v1156_v5 = vmul.f32 %v1660_v21, %v2591_v30 }
 0x3d8   : > { %1665 = vrcp.f32 %v1059_v14 }
 0x3da   : > { %v1662_v3 = vpop.eup %1661  ;;  %1422 = vmatpush1.bf16.xpose.msra.mxu0 %v1421_v12 }
 0x3db   : > { %v1159_v22 = vmul.f32 %v1662_v3, %v2589_v4  ;;  %v1158_v8 = vmul.f32 %v1662_v3, %v2590_v17 }
 0x3dd   : > { %v1423_v29 = vpack.c.bf16 %v1159_v22, %v1157_v47  ;;  %v1425_v58 = vpack.c.bf16 %v1158_v8, %v1156_v5 }
 0x3de   : > { %v1664_v9 = vpop.eup %1663 }
 0x3df   : > { %1424 = vmatprep.subr.bf16.mxu0 %v1423_v29  ;;  %v1161_v60 = vmul.f32 %v1664_v9, %v2592_v53  ;;  %v1160_v59 = vmul.f32 %v1664_v9, %v2595_v24 }
 0x3e2   : > { %v1666_v39 = vpop.eup %1665  ;;  %1426 = vmatpush1.bf16.xpose.msra.mxu0 %v1425_v58 }
 0x3e3   : > { %v1163_v27 = vmul.f32 %v1666_v39, %v2593_v49  ;;  %v1162_v55 = vmul.f32 %v1666_v39, %v2594_v32 }
 0x3e5   : > { %v1427_v34 = vpack.c.bf16 %v1163_v27, %v1161_v60  ;;  %v1429_v37 = vpack.c.bf16 %v1162_v55, %v1160_v59 }
 0x3e7   : > { %1428 = vmatprep.subr.bf16.mxu0 %v1427_v34 }
 0x3ea   : > { %1430 = vmatpush1.bf16.xpose.msra.mxu0 %v1429_v37 }
 0x41f   : > { %v1062_v13 = vpop.xlane.xlu1 %1061 }
 0x420   : > { %1667 = vrcp.f32 %v1062_v13 }
 0x423   : > { %v1065_v1 = vpop.xlane.xlu0 %1064 }
 0x424   : > { %1669 = vrcp.f32 %v1065_v1 }
 0x427   : > { %v1068_v7 = vpop.xlane.xlu1 %1067 }
 0x428   : > { %1671 = vrcp.f32 %v1068_v7 }
 0x42a   : > { %v1668_v63 = vpop.eup %1667 }
 0x42b   : > { %v1071_v10 = vpop.xlane.xlu0 %1070  ;;  %v1165_v23 = vmul.f32 %v1668_v63, %v2330_v41  ;;  %v1164_v57 = vmul.f32 %v1668_v63, %v2328_v31 }
 0x42c   : > { %1673 = vrcp.f32 %v1071_v10 }
 0x42e   : > { %v1670_v6 = vpop.eup %1669 }
 0x42f   : > { %v1167_v16 = vmul.f32 %v1670_v6, %v2338_v11  ;;  %v1166_v62 = vmul.f32 %v1670_v6, %v2336_v26 }
 0x430   : > { %v1074_v42 = vpop.xlane.xlu1 %1073 }
 0x431   : > { %v1431_v44 = vpack.c.bf16 %v1167_v16, %v1165_v23  ;;  %v1433_v40 = vpack.c.bf16 %v1166_v62, %v1164_v57  ;;  %1675 = vrcp.f32 %v1074_v42 }
 0x432   : > { %v1672_v0 = vpop.eup %1671 }
 0x433   : > { %1432 = vmatprep.subr.bf16.mxu0 %v1431_v44  ;;  %v1077_v61 = vpop.xlane.xlu0 %1076  ;;  %v1169_v33 = vmul.f32 %v1672_v0, %v2350_v38  ;;  %v1168_v11 = vmul.f32 %v1672_v0, %v2348_v25 }
 0x434   : > { %1677 = vrcp.f32 %v1077_v61  ;;  %1434 = vmatpush1.bf16.xpose.msra.mxu0 %v1433_v40 }
 0x436   : > { %v1674_v56 = vpop.eup %1673 }
 0x437   : > { %v1171_v41 = vmul.f32 %v1674_v56, %v2358_v54  ;;  %v1170_v31 = vmul.f32 %v1674_v56, %v2356_v36 }
 0x438   : > { %v1080_v20 = vpop.xlane.xlu1 %1079 }
 0x439   : > { %v1435_v48 = vpack.c.bf16 %v1171_v41, %v1169_v33  ;;  %v1437_v26 = vpack.c.bf16 %v1170_v31, %v1168_v11  ;;  %1679 = vrcp.f32 %v1080_v20 }
 0x43b   : > { %1436 = vmatprep.subr.bf16.mxu0 %v1435_v48  ;;  %v1083_v18 = vpop.xlane.xlu0 %1082  ;;  %v1676_v14 = vpop.eup %1675 }
 0x43c   : > { %v182_v12 = vpop.permute.xlu1 %181  ;;  %1681 = vrcp.f32 %v1083_v18  ;;  %1438 = vmatpush1.bf16.xpose.msra.mxu0 %v1437_v26  ;;  %v1173_v38 = vmul.f32 %v1676_v14, %v2370_v19  ;;  %v1172_v25 = vmul.f32 %v1676_v14, %v2368_v50 }
 0x43d   : > { %v273_v21 = vadd.f32 %v2421_v15, %v182_v12 }
 0x43e   : > { %v1678_v3 = vpop.eup %1677 }
 0x43f   : > { %1244 = vmatprep.mubr.f32.mxu0 %v273_v21  ;;  %v1175_v54 = vmul.f32 %v1678_v3, %v2376_v46  ;;  %v1174_v36 = vmul.f32 %v1678_v3, %v2374_v35  ;;  %v271_v35 = vadd.f32 %v2419_v43, %v182_v12 }
 0x441   : > { %v1439_v28 = vpack.c.bf16 %v1175_v54, %v1173_v38  ;;  %v1441_v47 = vpack.c.bf16 %v1174_v36, %v1172_v25 }
 0x443   : > { %1440 = vmatprep.subr.bf16.mxu0 %v1439_v28  ;;  %v1680_v4 = vpop.eup %1679 }
 0x444   : > { %1442 = vmatpush1.bf16.xpose.msra.mxu0 %v1441_v47  ;;  %v1177_v15 = vmul.f32 %v1680_v4, %v2386_v52  ;;  %v1176_v19 = vmul.f32 %v1680_v4, %v2384_v2  ;;  %v1683_v2 = vld [vmem:[%s1829_s30] sm:$0xff]  ;;  %s1690_s30 = scalar_lea.vmem %s1689_s29, 256 }
 0x445   : > { %p1692_p1 = scmp.lt.s32.totalorder %s1690_s30, %s1684_s28 }
 0x446   : > { %v1682_v22 = vpop.eup %1681 }
 0x447   : > { %v1179_v17 = vmul.f32 %v1682_v22, %v2392_v51  ;;  %v1178_v46 = vmul.f32 %v1682_v22, %v2390_v45  ;;  %p1693_p2 = por %p1692_p1, %p1691_p0 }
 0x449   : > { %v1443_v50 = vpack.c.bf16 %v1179_v17, %v1177_v15  ;;  %v1445_v8 = vpack.c.bf16 %v1178_v46, %v1176_v19  ;;  %p1694_p3 = pnand %p1693_p2, %p1687_p13 }
 0x44b   : > { %1444 = vmatprep.subr.bf16.mxu0 %v1443_v50 }
 0x44c   : > { %1446 = vmatpush1.bf16.xpose.msra.mxu0 %v1445_v8 }
 0x453   : > { %1245 = vmatmul.mubr.f32.vlgmr.msra.gmra.mrb[4].mxu0 %v271_v35 }
 0x526   : > { %v1246_v30 = vpop.f32.mrb[4].mxu0 }
 0x527   : > { %v1248_v5 = vpop.f32.mrb[5].mxu0 }
 0x528   : > { %v1253_v52 = vcombine.low %v1246_v30, %v1248_v5 }
 0x52a   : > { %v1255_v51 = vadd.f32 %v1683_v2, %v1253_v52 }
 0x52c   : > { %1256 = vst [vmem:[%s163_s19] sm:$0xff] %v1255_v51 }
 0x52d   : > { %1697 = shalt.err (!%p1694_p3)
}
 0x52e   : > { %s1698_s4 = scalar_lea.hbm %s2459_s26, 128  ;;  %s1702_s7 = scalar_lea.hbm %s2504_s3, 256 }
 0x52f   : > { %p1699_p4 = scmp.ne.s32.totalorder %s2459_s26, %s1698_s4  ;;  %p1703_p9 = scmp.lt.u32.totalorder %s2459_s26, %s2504_s3 }
 0x530   : > { %p1704_p10 = scmp.lt.u32.totalorder %s1702_s7, %s1698_s4  ;;  %p1706_p12 = scmp.lt.u32.totalorder %s1698_s4, %s2459_s26 }
 0x531   : > { %p1700_p7 = pnand %p1699_p4, %p1809_p5 }
 0x532   : > { %p1705_p11 = por %p1704_p10, %p1703_p9 }
 0x533   : > { %p1701_p8 = pneg %p1700_p7 }
 0x534   : > { %p1707_p13 = por %p1706_p12, %p1705_p11 }
 0x536   : > { %p1708_p0 = pnand %p1707_p13, %p1701_p8 }
 0x538   : > { %1711 = shalt.err (!%p1708_p0)
}
 0x539   : > { %1447 = dma.vmem_to_hbm [thread:$0]  (%p1809_p5), %s2461_s20, 128, %s2459_s26, %s1258_s27  }
 0x53a PF: > { %p1453_p1 = scmp.ge.s32.totalorder %s1746_s15, 2  ;;  %s1284_s10 = sand.u32 1, %s1734_s12  }
 0x53b   : > { %s1285_s11 = scalar_lea.sflag [#allocation3], %s1284_s10 }
 0x53c   : > { %p1450_p2 = pnand %p1453_p1, %p1813_p6 }
 0x53e   : > { %1729 = dma.done.wait (!%p1450_p2), %s1285_s11, 128  }
 0x53f   : > { %1731 = vsyncadd (!%p1450_p2), %s1285_s11, 4294967168  ;;  %p13_p3 = scmp.ge.s32.totalorder %s1796_s18, 4   ;;  %s2596_s12 = smov %s1738_s13 }
 0x540   : > { %s2597_s13 = smov %s1742_s14  ;;  %s2598_s14 = smov %s1807_s21 }
 0x541   : > { %s2599_s15 = smov %s1796_s18  ;;  %15 = sbr.rel (!%p13_p3) target bundleno = 3 (0x3), region = 67 }
 0x548   :  { %1290 = vsyncpa [#allocation3], 1 }
 0x549   :  { %1292 = vsyncpa [#allocation3 + $0x1], 1 }

</bundles_post_ra>
